<compile_context>
chip_gen: v5e
topology: v5e:2x2
jax: 0.10.0
libtpu: 0.0.40
codegen_flags: <defaults>
</compile_context>

<pallas_src>
import numpy as np
import jax
import jax.numpy as jnp
from jax.experimental import pallas as pl
from jax.experimental.pallas import tpu as pltpu

LEAKY_RATE = 0.1
BN_EPS = 1e-5


def _leaky(x):
    # LeakyReLU(0.1): for slope < 1 this equals max(x, 0.1 * x)
    return jnp.maximum(x, LEAKY_RATE * x)


def _pick_tile(n, cap):
    """Largest multiple of 128 <= cap that divides n, else the full extent n."""
    if n > cap and n % 128 == 0:
        t = (cap // 128) * 128
        while t >= 128:
            if n % t == 0:
                return t
            t -= 128
    return n


# --------------------------- KNN ranking-score kernel --------------------------
def _knn_score_kernel(x1t_ref, x2_ref, o_ref):
    # x1t: [1, TN1, 3]   x2: [1, 3, TN2]   o: [1, TN1, TN2]
    x1t = x1t_ref[0]
    x2 = x2_ref[0]
    s2 = jnp.sum(x2 * x2, axis=0, keepdims=True)                      # [1, TN2]
    cross = jnp.dot(x1t, x2, preferred_element_type=jnp.float32)      # [TN1, TN2]
    # NOTE: the per-query ||x1||^2 term is constant per output row, so it cannot
    # change the top-k ranking; it is dropped (only knn_idx is consumed).  The
    # score may therefore be negative — irrelevant, no sqrt is ever taken.
    o_ref[0] = (s2 - 2.0 * cross).astype(o_ref.dtype)


def pallas_knn_score(xyz1_t, xyz2, *, tile_n1_cap=512, tile_n2_cap=1024):
    """xyz1_t: [B, N1, 3], xyz2: [B, 3, N2] -> [B, N1, N2] ranking score."""
    B, N1, _ = xyz1_t.shape
    N2 = xyz2.shape[2]
    tn1 = _pick_tile(N1, tile_n1_cap)
    tn2 = _pick_tile(N2, tile_n2_cap)
    return pl.pallas_call(
        _knn_score_kernel,
        out_shape=jax.ShapeDtypeStruct((B, N1, N2), jnp.float32),
        grid=(B, N1 // tn1, N2 // tn2),
        in_specs=[
            pl.BlockSpec((1, tn1, 3), lambda b, i, j: (b, i, 0)),
            pl.BlockSpec((1, 3, tn2), lambda b, i, j: (b, 0, j)),
        ],
        out_specs=pl.BlockSpec((1, tn1, tn2), lambda b, i, j: (b, i, j)),
        compiler_params=pltpu.CompilerParams(
            dimension_semantics=("parallel", "parallel", "parallel")),
    )(xyz1_t, xyz2)


# ------------------------------ main fused kernel -------------------------------
def _make_mapping_kernel(K, n_mlp):
    """Fused biasfold + 1x1-conv MLP + max-pool(K) + regress, channels-first."""

    def kernel(*refs):
        p1_ref, gd_ref = refs[0], refs[1]
        wb_refs = refs[2:8]                          # (W, bias) x3, BN folded
        w0p_ref, w0gd_ref, b0_ref = refs[8:11]
        n_rest = 2 * (n_mlp - 1)
        mlp_refs = refs[11:11 + n_rest]              # (W_i, b_i) for layers 1..
        wr_ref = refs[11 + n_rest]
        br_ref = refs[12 + n_rest]
        o_ref = refs[13 + n_rest]
        f32 = jnp.float32

        # --- biasfold: 3 x LeakyReLU(W x + bias)  (eval-BN folded on host) ---
        h = p1_ref[0]                                                  # [Clat, TN1]
        for li in range(3):
            w_ref, b_ref = wb_refs[2 * li], wb_refs[2 * li + 1]
            h = _leaky(jnp.dot(w_ref[...], h, preferred_element_type=f32)
                       + b_ref[...])                                   # [H, TN1]

        # --- mlp layer 0, grouped_points1 part: identical for every neighbour ---
        shared0 = (jnp.dot(w0p_ref[...], h, preferred_element_type=f32)
                   + b0_ref[...])                                      # [M0, TN1]

        # --- per-neighbour path (static unroll over K) + max-pool over K ---
        pooled = None
        for k in range(K):
            gk = gd_ref[0, k]                                          # [D2+3, TN1]
            a = _leaky(jnp.dot(w0gd_ref[...], gk, preferred_element_type=f32)
                       + shared0)                                      # [M0, TN1]
            for li in range(n_mlp - 1):
                w_ref, b_ref = mlp_refs[2 * li], mlp_refs[2 * li + 1]
                a = _leaky(jnp.dot(w_ref[...], a, preferred_element_type=f32)
                           + b_ref[...])                               # [M_i, TN1]
            pooled = a if pooled is None else jnp.maximum(pooled, a)   # max_pool2d over K

        # --- regress: Conv1d(mlp[-1] -> 3) with bias, NO activation ---
        out = jnp.dot(wr_ref[...], pooled, preferred_element_type=f32) + br_ref[...]
        o_ref[0] = out.astype(o_ref.dtype)                             # [3, TN1] lane-dense

    return kernel


def pallas_mapping_core(points1, gd, kp, K, *, tile_cap=256,
                        vmem_limit=40 * 1024 * 1024):
    """points1: [B, Clat, N1] (raw), gd: [B, K, D2+3, N1] -> [B, 3, N1]."""
    B, Clat, N1 = points1.shape
    Dgd = gd.shape[2]
    tn1 = _pick_tile(N1, tile_cap)
    n_mlp = 1 + len(kp["mlp"])

    def const_spec(arr):
        nd = arr.ndim
        return pl.BlockSpec(arr.shape, lambda b, n, nd=nd: (0,) * nd)

    weights, specs = [], []
    # biasfold (BN folded); per-joint biases [H, N1] are tiled along N1
    for (w, bias) in kp["wb"]:
        weights += [w, bias]
        specs += [const_spec(w),
                  pl.BlockSpec((bias.shape[0], tn1), lambda b, n: (0, n))]
    # mlp layer 0 (split: points1-part vs grouped+direction-part) + bias
    weights += [kp["w0p"], kp["w0gd"], kp["b0"]]
    specs += [const_spec(kp["w0p"]), const_spec(kp["w0gd"]), const_spec(kp["b0"])]
    # remaining mlp layers
    for (w, b) in kp["mlp"]:
        weights += [w, b]
        specs += [const_spec(w), const_spec(b)]
    # regress
    weights += [kp["wr"], kp["br"]]
    specs += [const_spec(kp["wr"]), const_spec(kp["br"])]

    in_specs = [
        pl.BlockSpec((1, Clat, tn1), lambda b, n: (b, 0, n)),
        pl.BlockSpec((1, K, Dgd, tn1), lambda b, n: (b, 0, 0, n)),
    ] + specs

    kernel = _make_mapping_kernel(K, n_mlp)
    return pl.pallas_call(
        kernel,
        out_shape=jax.ShapeDtypeStruct((B, 3, N1), jnp.float32),
        grid=(B, N1 // tn1),
        in_specs=in_specs,
        out_specs=pl.BlockSpec((1, 3, tn1), lambda b, n: (b, 0, n)),
        compiler_params=pltpu.CompilerParams(
            dimension_semantics=("parallel", "parallel"),
            vmem_limit_bytes=vmem_limit),
    )(points1, gd, *weights)


# -------------------------------- full forward ----------------------------------
def mapping_with_bias_forward(xyz1, xyz2, points1, points2, kp, nsample):
    """MappingWithBias.forward (bn=False, use_leaky=True, mlp2=None, residual=False)."""
    B, _, N1 = xyz1.shape
    xyz1_t = jnp.transpose(xyz1, (0, 2, 1))                       # [B, N1, 3]

    score = pallas_knn_score(xyz1_t, xyz2)                        # [B, N1, N2]
    # torch.topk(largest=False, sorted=False); K-reduction downstream is a max,
    # which is order-invariant.  Tie-breaking may differ from torch on exactly
    # equidistant neighbours.
    _, knn_idx = jax.lax.top_k(-score, nsample)                   # [B, N1, K]

    # TODO(synk): the data-dependent KNN gather (index_points_group) stays in
    # plain JAX glue; fusing it into the main kernel via PrefetchScalarGridSpec
    # scalar-prefetched indices + manual DMA would remove this HBM round trip.
    idx_kn = jnp.transpose(knn_idx, (0, 2, 1))                    # [B, K, N1]
    gather_cf = jax.vmap(lambda feat, idx: feat[:, idx])          # [C,N2],[K,N1]->[C,K,N1]
    gp2 = gather_cf(points2, idx_kn)                              # [B, D2, K, N1]
    nxyz = gather_cf(xyz2, idx_kn)                                # [B, 3,  K, N1]
    dirs = nxyz - xyz1[:, :, None, :]                             # [B, 3,  K, N1]
    gd = jnp.concatenate([gp2, dirs], axis=1)                     # [B, D2+3, K, N1]
    gd = jnp.transpose(gd, (0, 2, 1, 3))                          # [B, K, D2+3, N1]

    return pallas_mapping_core(points1, gd, kp, nsample)          # [B, 3, N1]


# --------------------------- pure-JAX reference (spec) ---------------------------
def reference_forward(xyz1, xyz2, points1, points2, tp, nsample):
    B, _, N1 = xyz1.shape
    x1t = jnp.transpose(xyz1, (0, 2, 1))
    x2t = jnp.transpose(xyz2, (0, 2, 1))

    # biasfold: BiasConv1d x3 (Conv1d no-bias + per-joint bias + eval BN + LeakyReLU)
    p = points1
    for (W, bias, gamma, beta, mean, var) in tp["biasfold"]:
        z = jnp.einsum("oc,bcn->bon", W, p) + bias[None]
        z = (gamma[None, :, None] * (z - mean[None, :, None])
             / jnp.sqrt(var[None, :, None] + BN_EPS) + beta[None, :, None])
        p = _leaky(z)
    p1t = jnp.transpose(p, (0, 2, 1))                              # [B, N1, D1]
    p2t = jnp.transpose(points2, (0, 2, 1))                        # [B, N2, D2]

    sq = (jnp.sum(x1t ** 2, -1)[:, :, None] + jnp.sum(x2t ** 2, -1)[:, None, :]
          - 2.0 * jnp.einsum("bnc,bmc->bnm", x1t, x2t))
    _, idx = jax.lax.top_k(-sq, nsample)
    gather = jax.vmap(lambda pts, i: pts[i])
    nxyz = gather(x2t, idx)                                        # [B, N1, K, 3]
    direction = nxyz - x1t[:, :, None, :]
    g2 = gather(p2t, idx)                                          # [B, N1, K, D2]
    g1 = jnp.broadcast_to(p1t[:, :, None, :],
                          (B, N1, nsample, p1t.shape[-1]))         # [B, N1, K, D1]
    h = jnp.concatenate([g1, g2, direction], axis=-1)              # [B, N1, K, D1+D2+3]
    for (W, b) in tp["mlp"]:
        h = _leaky(jnp.einsum("bnkc,oc->bnko", h, W) + b[None, None, None, :])
    pooled = jnp.max(h, axis=2)                                    # [B, N1, mlp[-1]]
    out = jnp.einsum("bnc,oc->bno", pooled, tp["WR"]) + tp["BR"][None, None, :]
    return jnp.transpose(out, (0, 2, 1))                           # [B, 3, N1]


# ----------------------------------- self test -----------------------------------
if __name__ == "__main__":
    # Small config: nsample=8, joints N1=16, N2=64 local points,
    # in_channel=4, latent_channel=32 (-> D1=16), mlp=[16, 32], mlp2=None,
    # bn=False (module level), residual=False.
    B, N1, N2 = 2, 16, 64
    C_IN, LATENT, K = 4, 32, 8
    H = LATENT // 2
    MLP = (16, 32)
    D_CAT = H + C_IN + 3

    key = jax.random.PRNGKey(0)
    keys = jax.random.split(key, 40)
    ki = iter(range(40))

    def randn(shape, scale=1.0):
        return (scale * jax.random.normal(keys[next(ki)], shape,
                                          dtype=jnp.float32)).astype(jnp.float32)

    # ---- PyTorch-layout parameters ([out, in]) + eval-mode BN stats ----
    def bias_conv(cin, cout):
        W = randn((cout, cin), 1.0 / np.sqrt(cin))
        bias = randn((cout, N1), 0.2)                         # nn.Parameter [out, joints]
        gamma = 1.0 + randn((cout,), 0.1)
        beta = randn((cout,), 0.1)
        mean = randn((cout,), 0.1)
        var = 0.5 + jax.nn.sigmoid(randn((cout,), 1.0))       # positive running var
        return (W, bias, gamma, beta, mean, var)

    tp = {
        "biasfold": [bias_conv(LATENT, H), bias_conv(H, H), bias_conv(H, H)],
        "mlp": [(randn((MLP[0], D_CAT), 1.0 / np.sqrt(D_CAT)), randn((MLP[0],), 0.1)),
                (randn((MLP[1], MLP[0]), 1.0 / np.sqrt(MLP[0])), randn((MLP[1],), 0.1))],
        "WR": randn((3, MLP[1]), 1.0 / np.sqrt(MLP[1])),
        "BR": randn((3,), 0.1),
    }

    # ---- kernel-layout parameters (eval-BN folded, channels-first [out, in]) ----
    def fold_biasfold(W, bias, gamma, beta, mean, var):
        s = gamma / jnp.sqrt(var + BN_EPS)
        Wf = W * s[:, None]
        bf = bias * s[:, None] + (beta - s * mean)[:, None]
        return (Wf.astype(jnp.float32), bf.astype(jnp.float32))

    W0, b0 = tp["mlp"][0]
    kp = {
        "wb": [fold_biasfold(*layer) for layer in tp["biasfold"]],
        "w0p": W0[:, :H],                       # acts on biasfolded points1
        "w0gd": W0[:, H:],                      # acts on [grouped points2 | direction]
        "b0": b0.reshape(-1, 1),
        "mlp": [(W, b.reshape(-1, 1)) for (W, b) in tp["mlp"][1:]],
        "wr": tp["WR"],
        "br": tp["BR"].reshape(-1, 1),
    }

    xyz1 = randn((B, 3, N1))
    xyz2 = randn((B, 3, N2))
    points1 = randn((B, LATENT, N1))
    points2 = randn((B, C_IN, N2))

    out = mapping_with_bias_forward(xyz1, xyz2, points1, points2, kp, K)
    out = jax.block_until_ready(out)
    assert out.shape == (B, 3, N1), out.shape

    ref = jax.block_until_ready(
        reference_forward(xyz1, xyz2, points1, points2, tp, K))
    np.testing.assert_allclose(np.asarray(out), np.asarray(ref), rtol=2e-2, atol=2e-2)

    print("KERNEL_OK")
</pallas_src>

<mosaic_0001>
module attributes {stable_mosaic.version = 11 : i64} {
  func.func @_knn_score_kernel(%arg0: i32, %arg1: i32, %arg2: i32, %arg3: memref<1x16x3xf32, #tpu.memory_space<vmem>>, %arg4: memref<1x3x64xf32, #tpu.memory_space<vmem>>, %arg5: memref<1x16x64xf32, #tpu.memory_space<vmem>>) attributes {dimension_semantics = [#tpu.dimension_semantics<parallel>, #tpu.dimension_semantics<parallel>, #tpu.dimension_semantics<parallel>], iteration_bounds = array<i64: 2, 1, 1>, scalar_prefetch = 0 : i64, scratch_operands = 0 : i64, tpu.core_type = #tpu.core_type<tc>, window_params = [{transform_indices = @transform_0, window_bounds = array<i64: 1, 16, 3>}, {transform_indices = @transform_1, window_bounds = array<i64: 1, 3, 64>}, {transform_indices = @transform_2, window_bounds = array<i64: 1, 16, 64>}]} {
    %c0 = arith.constant 0 : index
    %c0_0 = arith.constant 0 : index
    %c0_1 = arith.constant 0 : index
    %0 = vector.load %arg3[%c0, %c0_0, %c0_1] : memref<1x16x3xf32, #tpu.memory_space<vmem>>, vector<1x16x3xf32>
    %1 = vector.shape_cast %0 : vector<1x16x3xf32> to vector<16x3xf32>
    %c0_2 = arith.constant 0 : index
    %c0_3 = arith.constant 0 : index
    %c0_4 = arith.constant 0 : index
    %2 = vector.load %arg4[%c0_2, %c0_3, %c0_4] : memref<1x3x64xf32, #tpu.memory_space<vmem>>, vector<1x3x64xf32>
    %3 = vector.shape_cast %2 : vector<1x3x64xf32> to vector<3x64xf32>
    %4 = arith.mulf %3, %3 : vector<3x64xf32>
    %cst = arith.constant dense<0.000000e+00> : vector<64xf32>
    %5 = vector.multi_reduction <add>, %4, %cst [0] : vector<3x64xf32> to vector<64xf32>
    %6 = vector.shape_cast %5 : vector<64xf32> to vector<1x64xf32>
    %cst_5 = arith.constant dense<0.000000e+00> : vector<16x64xf32>
    %7 = tpu.matmul %1, %3, %cst_5 {dimension_numbers = #tpu.dot_dimension_numbers<[1], [0], [0], [1], [0, 0, 1, 1], [], []>} : vector<16x3xf32>, vector<3x64xf32>, vector<16x64xf32> -> vector<16x64xf32>
    %cst_6 = arith.constant 2.000000e+00 : f32
    %8 = vector.broadcast %cst_6 : f32 to vector<16x64xf32>
    %9 = arith.mulf %8, %7 : vector<16x64xf32>
    %10 = vector.broadcast %6 : vector<1x64xf32> to vector<16x64xf32>
    %11 = arith.subf %10, %9 : vector<16x64xf32>
    %c0_7 = arith.constant 0 : index
    %c0_8 = arith.constant 0 : index
    %c0_9 = arith.constant 0 : index
    %12 = vector.load %arg5[%c0_7, %c0_8, %c0_9] : memref<1x16x64xf32, #tpu.memory_space<vmem>>, vector<1x16x64xf32>
    %13 = vector.shape_cast %12 : vector<1x16x64xf32> to vector<16x64xf32>
    %14 = vector.shape_cast %11 : vector<16x64xf32> to vector<1x16x64xf32>
    tpu.vector_store %arg5[%c0_7, %c0_8, %c0_9], %14 {strides = array<i32>} : memref<1x16x64xf32, #tpu.memory_space<vmem>>, vector<1x16x64xf32>,
    return
  }
  func.func @transform_0(%arg0: i32, %arg1: i32, %arg2: i32) -> (i32, i32, i32) {
    %c0_i32 = arith.constant 0 : i32
    %c0_i32_0 = arith.constant 0 : i32
    return %arg0, %arg1, %c0_i32 : i32, i32, i32
  }
  func.func @transform_1(%arg0: i32, %arg1: i32, %arg2: i32) -> (i32, i32, i32) {
    %c0_i32 = arith.constant 0 : i32
    %c0_i32_0 = arith.constant 0 : i32
    return %arg0, %c0_i32, %arg2 : i32, i32, i32
  }
  func.func @transform_2(%arg0: i32, %arg1: i32, %arg2: i32) -> (i32, i32, i32) {
    %c0_i32 = arith.constant 0 : i32
    return %arg0, %arg1, %arg2 : i32, i32, i32
  }
}

</mosaic_0001>

<bundles_post_ra>
// kernel: tpu_custom_call.1
= control target key start
LH: loop header
LB: loop body
LE: loop exit
PB: predicated region body
PF: predicated region fallthrough
CT: control target
= control target key end

     0   :  { %7 = vsyncpa [#allocation3], 0  ;;  %s654_s0 = inlined_call_operand.vmem [shape: f32[2,16,3], index: 0, kind: input, shape index: {}]   ;;  %s655_s1 = inlined_call_operand.vmem [shape: f32[2,3,64], index: 1, kind: input, shape index: {}]   ;;  %s656_s2 = inlined_call_operand.hbm [shape: f32[2,16,64], index: 2, kind: output, shape index: {}]  }
   0x1   :  { %9 = vsyncpa [#allocation3 + $0x1], 0  ;;  %s554_s9 = smov 0   ;;  %s556_s10 = smov 0  }
   0x2   :  { %s558_s11 = smov 0   ;;  %s560_s12 = smov 0  }
   0x3   :  { %s562_s13 = smov 0   ;;  %s564_s14 = smov 0  }
   0x4 LB: > { %s380_s15 = sadd.s32 4294967295, %s535_s14   ;;  %s381_s16 = sadd.s32 4294967294, %s535_s14   ;;  %s535_s14 = sphi %s564_s14, %s15_s14   ;;  %s531_s13 = sphi %s562_s13, %s663_s13   ;;  %s527_s12 = sphi %s560_s12, %s662_s12   ;;  %s523_s11 = sphi %s558_s11, %s661_s11   ;;  %s519_s10 = sphi %s556_s10, %s660_s10   ;;  %s515_s9 = sphi %s554_s9, %s659_s9  }
   0x5   : > { %s34_s17 = sadd.s32 1, %s531_s13  ;;  %s101_s18 = sadd.s32 1, %s523_s11 }
   0x6   : > { %p36_p0 = scmp.ge.s32.totalorder %s34_s17, 2  ;;  %p111_p1 = scmp.ne.s32.totalorder %s523_s11, %s519_s10 }
   0x7   : > { %p112_p2 = scmp.eq.s32.totalorder %s380_s15, 1  ;;  %p117_p3 = scmp.ne.s32.totalorder %s519_s10, %s515_s9 }
   0x8   : > { %s665_s17 = smov (%p36_p0, %s34_s17), 0  ;;  %p118_p5 = scmp.eq.s32.totalorder %s381_s16, 1 }
   0x9   : > { %p594_p4 = por %p112_p2, %p111_p1  ;;  %s94_s20 = ssub.s32 %s531_s13, %s665_s17 }
   0xa   : > { %p384_p6 = scmp.ge.s32.totalorder %s535_s14, 1  ;;  %p99_p7 = scmp.eq.s32.totalorder %s94_s20, 0 }
   0xb   : > { %p601_p8 = por %p118_p5, %p117_p3  ;;  %p159_p9 = scmp.lt.s32.totalorder %s535_s14, 3 }
   0xc   : > { %s607_s22 = scalar_select %p99_p7, %s523_s11, %s101_s18  }
   0xd   : > { %p160_p10 = pnand %p384_p6, %p159_p9 }
   0xe   : > { %p193_p11 = scmp.lt.s32.totalorder (!%p160_p10), %s527_s12, 1  ;;  %s189_s4 = sand.u32 (!%p160_p10), 1, %s519_s10  }
   0xf   : > { %163 = sbr.rel (%p160_p10) target bundleno = 161 (0xa1), region = 28  ;;  %s385_s5 = sshll.u32 (!%p160_p10), %s189_s4, 4 }
  0x10   : > { %s398_s6 = sshll.u32 (!%p160_p10), %s527_s12, 4  ;;  %s191_s16 = scalar_lea.vmem (!%p160_p10), [#allocation2], %s385_s5 }
  0x11   : > { %s278_s15 = scalar_lea.hbm (!%p160_p10), %s656_s2, %s398_s6  ;;  %s279_s18 = sshll.u32 (!%p160_p10), %s191_s16, 4  ;;  %s280_s18 = int_to_ptr.vmem [resolvable:$true] %s279_s18 }
  0x12   : > { %s281_s20 = sshll.u32 (!%p160_p10), %s278_s15, 4  ;;  %s477_s27 = scalar_lea.hbm (!%p160_p10), %s656_s2, 32  ;;  %s282_s20 = int_to_ptr.hbm [resolvable:$true] %s281_s20 }
  0x14   : > { %s194_s23 = scalar_select %p193_p11, %s527_s12, 1  ;;  %vm229_vm0 = vcmask 1042432   ;;  %vm222_vm1 = vcmask 23552   ;;  %vm214_vm2 = vcmask 518144   ;;  %vm260_vm3 = vcmask 523264  }
  0x15   : > { %s264_s12 = scalar_lea.sflag [#allocation3], %s189_s4 }
  0x16   : > { %s388_s24 = sshll.u32 %s194_s23, 2  ;;  %s397_s25 = sshll.u32 %s194_s23, 4 }
  0x17   : > { %s208_s28 = scalar_lea.vmem %s655_s1, %s388_s24  ;;  %s200_s3 = scalar_lea.vmem %s654_s0, %s397_s25 }
  0x18   : > { %v212_v0 = vld [vmem:[%s208_s28] sm:$0x7]  ;;  %v211_v2 = vld [vmem:[%s200_s3 + $0x8] sm:$0xff]  ;;  %s471_s23 = sshra.s32 %s282_s20, 4  ;;  %s472_s23 = int_to_ptr.hbm [resolvable:$true] %s471_s23 }
  0x19   : > { %v210_v1 = vld [vmem:[%s200_s3] sm:$0xff]  ;;  %389 = vmatpush.msk.msra.mxu0 %vm229_vm0, %v212_v0  ;;  %399 = vmatpush.msk.msra.mxu1 %vm229_vm0, %v212_v0  ;;  %v213_v3 = vmul.f32 %v212_v0, %v212_v0  ;;  %s473_s24 = scalar_lea.hbm %s472_s23, 16  ;;  %p478_p1 = scmp.lt.s32.totalorder %s472_s23, %s656_s2 }
  0x1a   : > { %390 = vmatmul.msk.f32.vlgmr.msra.gmra.mxu0 %vm222_vm1, %v210_v1  ;;  %391 = vmatmul.msk.f32.vlgmr.msra.gmra.mxu1 %vm222_vm1, %v211_v2  ;;  %p474_p12 = scmp.ne.s32.totalorder %s472_s23, %s473_s24  ;;  %p479_p2 = scmp.lt.s32.totalorder %s477_s27, %s473_s24 }
  0x1b   : > { %v215_v4 = vsel %vm214_vm2, %v213_v3, 0.0 }
  0x1c   : > { %v216_v5 = vrot.slane %v215_v4, 4  ;;  %p475_p13 = pnand %p474_p12, %p594_p4  ;;  %p480_p3 = por %p479_p2, %p478_p1 }
  0x1e   : > { %v217_v6 = vadd.f32 %v216_v5, %v215_v4  ;;  %p476_p0 = pneg %p475_p13 }
  0x20   : > { %v218_v7 = vrot.slane %v217_v6, 2  ;;  %p481_p5 = pnand %p480_p3, %p476_p0 }
  0x22   : > { %v219_v8 = vadd.f32 %v218_v7, %v217_v6 }
  0x24   : > { %v220_v9 = vrot.slane %v219_v8, 1 }
  0x26   : > { %v221_v10 = vadd.f32 %v220_v9, %v219_v8 }
  0x97   : > { %v250_v11 = vpop.f32.mrf.mxu0  ;;  %v253_v12 = vpop.f32.mrf.mxu1 }
  0x98   : > { %v256_v13 = vmul.f32 2.0, %v250_v11  ;;  %v257_v14 = vmul.f32 2.0, %v253_v12 }
  0x9a   : > { %v258_v15 = vsub.f32 %v221_v10, %v256_v13  ;;  %v259_v16 = vsub.f32 %v221_v10, %v257_v14 }
  0x9c   : > { %261 = vst.msk [vmem:[%s191_s16] sm:$0xff] %vm260_vm3, %v258_v15 }
  0x9d   : > { %262 = vst.msk [vmem:[%s191_s16 + $0x8] sm:$0xff] %vm260_vm3, %v259_v16 }
  0x9e   : > { %484 = shalt.err (!%p481_p5)
}
  0x9f   : > { %s537_s30 = smov 128   ;;  %s538_s3 = smov 8  }
  0xa0   : > { %400 = dma.vmem_to_hbm [thread:$0]  (%p594_p4), %s280_s18, 256, %s282_s20, %s264_s12, %s537_s30, %s537_s30, %s538_s3  }
  0xa1 PF: > { %p406_p6 = scmp.ge.s32.totalorder %s535_s14, 2  ;;  %s296_s4 = sand.u32 1, %s515_s9  }
  0xa2   : > { %s297_s5 = scalar_lea.sflag [#allocation3], %s296_s4 }
  0xa3   : > { %p403_p7 = pnand %p406_p6, %p601_p8 }
  0xa5   : > { %p404_p9 = pneg %p403_p7 }
  0xa7   : > { %510 = dma.done.wait (%p404_p9), %s297_s5, 256  }
  0xa8   : > { %512 = vsyncadd (%p404_p9), %s297_s5, 4294967040  ;;  %s15_s14 = sadd.s32 1, %s535_s14   ;;  %s659_s9 = smov %s519_s10 }
  0xa9   : > { %p12_p10 = scmp.ge.s32.totalorder %s15_s14, 4   ;;  %s660_s10 = smov %s523_s11 }
  0xaa   : > { %s661_s11 = smov %s607_s22  ;;  %s662_s12 = smov %s531_s13 }
  0xab   : > { %s663_s13 = smov %s665_s17  ;;  %14 = sbr.rel (!%p12_p10) target bundleno = 4 (0x4), region = 66 }
  0xb0   :  { %303 = vsyncpa [#allocation3], 1 }
  0xb1   :  { %305 = vsyncpa [#allocation3 + $0x1], 1 }

</bundles_post_ra>
